<compile_context>
chip_gen: v5e
topology: v5e:2x2
jax: 0.10.0
libtpu: 0.0.40
codegen_flags: <defaults>
</compile_context>

<pallas_src>
import functools

import numpy as np
import jax
import jax.numpy as jnp
from jax.experimental import pallas as pl
from jax.experimental.pallas import tpu as pltpu


def ssam_kernel(x_ref, w_ref, b_ref, g_ref, sf_ref, g_acc, sf_acc, *, inv_hw):
    """One (Bt, C, THW) spatial tile of up to Bt images.

    x_ref : (Bt, C, THW)  compute dtype (bf16/f32)
    w_ref : (Kp, C)       compute dtype
    b_ref : (Kp, 1)       f32
    g_ref : (Bt, Kp, 1)   f32 output (spatial-mean conv logits)
    sf_ref: (Bt, Kp, C)   f32 output (semantic features)
    g_acc / sf_acc : f32 VMEM accumulators, resident across the hw grid axis.
    """
    hw = pl.program_id(1)

    @pl.when(hw == 0)
    def _init():
        g_acc[...] = jnp.zeros_like(g_acc)
        sf_acc[...] = jnp.zeros_like(sf_acc)

    w = w_ref[...]                      # (Kp, C)
    bias = b_ref[...]                   # (Kp, 1) f32
    bt = x_ref.shape[0]

    # Static unroll over the (small) batch block: each image is an independent
    # pair of MXU matmuls with the spatial tile as the contraction depth.
    for bi in range(bt):
        xb = x_ref[bi]                                               # (C, THW)
        # Bias-free 1x1 conv at every spatial position (MXU, f32 accumulate).
        cam_nb = jnp.dot(w, xb, preferred_element_type=jnp.float32)  # (Kp, THW)
        # Spatial sum of the bias-free conv (XLU lane reduce, free under DMA);
        # bias is added once at finalize.
        g_acc[bi, :, :] = g_acc[bi, :, :] + jnp.sum(cam_nb, axis=1, keepdims=True)
        # sigmoid -> EUP slot, free filler under the x DMA.
        s = jax.nn.sigmoid(cam_nb + bias)                            # (Kp, THW) f32
        # sf contribution: contract sigmoid(cam) with x over the spatial tile.
        sf_acc[bi, :, :] = sf_acc[bi, :, :] + jax.lax.dot_general(
            s.astype(xb.dtype), xb,
            dimension_numbers=(((1,), (1,)), ((), ())),
            preferred_element_type=jnp.float32)                      # (Kp, C)

    @pl.when(hw == pl.num_programs(1) - 1)
    def _finalize():
        g_ref[...] = g_acc[...] * inv_hw + bias[None, :, :]
        sf_ref[...] = sf_acc[...] * inv_hw


def _pick_spatial_tile(hw_total, row_bytes, budget):
    """Largest lane extent that divides HW, is a multiple of 128 (or the full
    extent) and keeps one x block under `budget` bytes."""
    max_thw = max(128, budget // max(row_bytes, 1))
    if hw_total <= max_thw:
        return hw_total                       # single full-extent tile
    t = (max_thw // 128) * 128
    while t >= 128:
        if hw_total % t == 0:
            return t
        t -= 128
    # TODO(synk): zero-pad HW in HBM (sf is safe, g already bias-free) for
    # spatial sizes with no 128-aligned divisor; fall back to one full tile.
    return hw_total


def ssam_forward(x_nchw, weight, bias, *, compute_dtype=jnp.bfloat16,
                 max_x_block_bytes=4 << 20):
    """x_nchw: (B, C, H, W), weight: (K, C, 1, 1), bias: (K,)
    -> (g: (B, K) f32, sf: (B, K, C) f32)."""
    B, C, H, W = x_nchw.shape
    K = weight.shape[0]
    HW = H * W

    cdt = np.dtype(compute_dtype)
    itemsize = cdt.itemsize
    sublane_pack = 8 * max(1, 4 // itemsize)          # 8 (f32) / 16 (bf16)
    Kp = -(-K // sublane_pack) * sublane_pack

    # Free reshape of NCHW (no transpose); cast to compute dtype (bf16 default
    # halves the dominant HBM->VMEM read of x).
    x_flat = x_nchw.reshape(B, C, HW).astype(cdt)
    w2 = jnp.zeros((Kp, C), cdt).at[:K].set(weight.reshape(K, C).astype(cdt))
    b2 = jnp.zeros((Kp, 1), jnp.float32).at[:K, 0].set(bias.astype(jnp.float32))

    # Batch blocking: if a whole image is small, pack Bt images per grid step
    # so each x DMA is a few MiB, but keep >= 2 steps on the parallel batch
    # axis so both v7x TensorCores get work.
    per_image_bytes = C * HW * itemsize
    Bt = 1
    if B > 2 and per_image_bytes <= max_x_block_bytes:
        limit = min(B // 2, max(1, max_x_block_bytes // per_image_bytes))
        for cand in range(limit, 0, -1):
            if B % cand == 0:
                Bt = cand
                break
    # TODO(synk): for B == 1 on v7x, split HW over a leading parallel axis with
    # partial accumulators summed in the wrapper so the second TensorCore is used.

    THW = _pick_spatial_tile(HW, Bt * C * itemsize, max_x_block_bytes)
    n_hw = HW // THW
    grid = (B // Bt, n_hw)

    # Explicit VMEM budget (double-buffered blocks + f32 accumulators) with
    # headroom, capped at v7x's 64 MiB physical VMEM.
    vmem_bytes = (
        2 * Bt * C * THW * itemsize               # x (double-buffered)
        + 2 * Kp * C * itemsize                   # w2
        + 2 * Kp * 128 * 4                        # b2 (lane-padded)
        + 2 * Bt * Kp * 128 * 4                   # g out (lane-padded)
        + 2 * Bt * Kp * C * 4                     # sf out
        + Bt * Kp * 128 * 4 + Bt * Kp * C * 4)    # accumulators
    vmem_limit = int(min(64 << 20, max(16 << 20, 2 * vmem_bytes)))

    cost = pl.CostEstimate(
        flops=4 * B * HW * C * Kp,                # two (Kp,C)x(C,THW)-class matmuls
        transcendentals=B * Kp * HW,              # sigmoid
        bytes_accessed=(B * C * HW * itemsize + Kp * C * itemsize
                        + Kp * 4 + B * Kp * 4 + B * Kp * C * 4),
    )

    kernel = functools.partial(ssam_kernel, inv_hw=float(1.0 / HW))

    g_col, sf_p = pl.pallas_call(
        kernel,
        out_shape=(
            jax.ShapeDtypeStruct((B, Kp, 1), jnp.float32),
            jax.ShapeDtypeStruct((B, Kp, C), jnp.float32),
        ),
        grid_spec=pltpu.PrefetchScalarGridSpec(
            num_scalar_prefetch=0,
            grid=grid,
            in_specs=[
                pl.BlockSpec((Bt, C, THW), lambda b, h: (b, 0, h)),
                pl.BlockSpec((Kp, C), lambda b, h: (0, 0)),
                pl.BlockSpec((Kp, 1), lambda b, h: (0, 0)),
            ],
            out_specs=[
                pl.BlockSpec((Bt, Kp, 1), lambda b, h: (b, 0, 0)),
                pl.BlockSpec((Bt, Kp, C), lambda b, h: (b, 0, 0)),
            ],
            scratch_shapes=[
                pltpu.VMEM((Bt, Kp, 1), jnp.float32),
                pltpu.VMEM((Bt, Kp, C), jnp.float32),
            ],
        ),
        compiler_params=pltpu.CompilerParams(
            dimension_semantics=("parallel", "arbitrary"),
            vmem_limit_bytes=vmem_limit,
        ),
        cost_estimate=cost,
    )(x_flat, w2, b2)

    g = g_col.reshape(B, Kp)[:, :K]
    sf = sf_p[:, :K, :]
    return g, sf


def ssam_reference(x, weight, bias):
    """Pure-JAX reference mirroring the PyTorch forward (for verification)."""
    B, C, H, W = x.shape
    K = weight.shape[0]
    w = weight.reshape(K, C)
    g = jnp.einsum("bc,kc->bk", jnp.mean(x, axis=(2, 3)), w) + bias
    cam = jnp.einsum("bchw,kc->bkhw", x, w) + bias[None, :, None, None]
    sf = jnp.mean(jax.nn.sigmoid(cam)[:, :, None, :, :] * x[:, None, :, :, :],
                  axis=(3, 4))
    return g, sf


if __name__ == "__main__":
    # Small shapes consistent with the module: dim (C) = 32, nbclass (K) = 17.
    B, C, H, W, K = 2, 32, 16, 16, 17
    key = jax.random.PRNGKey(0)
    kx, kw, kb, kx2 = jax.random.split(key, 4)
    x = jax.random.normal(kx, (B, C, H, W), dtype=jnp.float32)
    weight = jax.random.normal(kw, (K, C, 1, 1), dtype=jnp.float32) * 0.05
    bias = jax.random.normal(kb, (K,), dtype=jnp.float32) * 0.05

    g_ref, sf_ref = ssam_reference(x, weight, bias)

    # 1) Default path: bf16 x/w (halved HBM read), f32 MXU accumulation.
    g, sf = jax.block_until_ready(ssam_forward(x, weight, bias))
    assert g.shape == (B, K) and sf.shape == (B, K, C)
    assert jnp.allclose(g, g_ref, atol=2e-2, rtol=2e-2)
    assert jnp.allclose(sf, sf_ref, atol=2e-2, rtol=2e-2)

    # 2) f32 strict check of the algorithm.
    g32, sf32 = jax.block_until_ready(
        ssam_forward(x, weight, bias, compute_dtype=jnp.float32))
    assert jnp.allclose(g32, g_ref, atol=1e-4, rtol=1e-4)
    assert jnp.allclose(sf32, sf_ref, atol=1e-4, rtol=1e-4)

    # 3) Force the HW-tiled reduction path (THW=128 -> 2 spatial grid steps)
    #    to exercise the f32 VMEM accumulators + pl.when init/finalize.
    g_t, sf_t = jax.block_until_ready(
        ssam_forward(x, weight, bias, compute_dtype=jnp.float32,
                     max_x_block_bytes=C * 128 * 4))
    assert jnp.allclose(g_t, g_ref, atol=1e-4, rtol=1e-4)
    assert jnp.allclose(sf_t, sf_ref, atol=1e-4, rtol=1e-4)

    # 4) Exercise batch blocking (B=8 -> Bt=4 images per grid step).
    B2 = 8
    x2 = jax.random.normal(kx2, (B2, C, H, W), dtype=jnp.float32)
    g2_ref, sf2_ref = ssam_reference(x2, weight, bias)
    g2, sf2 = jax.block_until_ready(ssam_forward(x2, weight, bias))
    assert g2.shape == (B2, K) and sf2.shape == (B2, K, C)
    assert jnp.allclose(g2, g2_ref, atol=2e-2, rtol=2e-2)
    assert jnp.allclose(sf2, sf2_ref, atol=2e-2, rtol=2e-2)

    print("KERNEL_OK")
</pallas_src>

<mosaic_0001>
module attributes {stable_mosaic.version = 11 : i64} {
  func.func @ssam_kernel(%arg0: i32, %arg1: i32, %arg2: memref<1x32x256xbf16, #tpu.memory_space<vmem>>, %arg3: memref<32x32xbf16, #tpu.memory_space<vmem>>, %arg4: memref<32x1xf32, #tpu.memory_space<vmem>>, %arg5: memref<1x32x1xf32, #tpu.memory_space<vmem>>, %arg6: memref<1x32x32xf32, #tpu.memory_space<vmem>>, %arg7: memref<1x32x1xf32, #tpu.memory_space<vmem>>, %arg8: memref<1x32x32xf32, #tpu.memory_space<vmem>>) attributes {dimension_semantics = [#tpu.dimension_semantics<parallel>, #tpu.dimension_semantics<arbitrary>], iteration_bounds = array<i64: 2, 1>, scalar_prefetch = 0 : i64, scratch_operands = 2 : i64, tpu.core_type = #tpu.core_type<tc>, window_params = [{transform_indices = @transform_0, window_bounds = array<i64: 1, 32, 256>}, {pipeline_mode = #tpu.pipeline_mode<synchronous>, transform_indices = @transform_1, window_bounds = array<i64: 32, 32>}, {pipeline_mode = #tpu.pipeline_mode<synchronous>, transform_indices = @transform_2, window_bounds = array<i64: 32, 1>}, {transform_indices = @transform_3, window_bounds = array<i64: 1, 32, 1>}, {transform_indices = @transform_4, window_bounds = array<i64: 1, 32, 32>}]} {
    %c0_i32 = arith.constant 0 : i32
    %0 = arith.cmpi eq, %arg1, %c0_i32 : i32
    %1 = arith.extui %0 : i1 to i32
    %c0_i32_0 = arith.constant 0 : i32
    %2 = arith.cmpi ne, %1, %c0_i32_0 : i32
    scf.if %2 {
      %cst_24 = arith.constant 0.000000e+00 : f32
      %34 = vector.broadcast %cst_24 : f32 to vector<1x32x1xf32>
      %c0_25 = arith.constant 0 : index
      %c0_26 = arith.constant 0 : index
      %c0_27 = arith.constant 0 : index
      %35 = vector.load %arg7[%c0_25, %c0_26, %c0_27] : memref<1x32x1xf32, #tpu.memory_space<vmem>>, vector<1x32x1xf32>
      tpu.vector_store %arg7[%c0_25, %c0_26, %c0_27], %34 {strides = array<i32>} : memref<1x32x1xf32, #tpu.memory_space<vmem>>, vector<1x32x1xf32>,
      %cst_28 = arith.constant 0.000000e+00 : f32
      %36 = vector.broadcast %cst_28 : f32 to vector<1x32x32xf32>
      %c0_29 = arith.constant 0 : index
      %c0_30 = arith.constant 0 : index
      %c0_31 = arith.constant 0 : index
      %37 = vector.load %arg8[%c0_29, %c0_30, %c0_31] : memref<1x32x32xf32, #tpu.memory_space<vmem>>, vector<1x32x32xf32>
      tpu.vector_store %arg8[%c0_29, %c0_30, %c0_31], %36 {strides = array<i32>} : memref<1x32x32xf32, #tpu.memory_space<vmem>>, vector<1x32x32xf32>,
    } else {
    }
    %c0 = arith.constant 0 : index
    %c0_1 = arith.constant 0 : index
    %3 = vector.load %arg3[%c0, %c0_1] : memref<32x32xbf16, #tpu.memory_space<vmem>>, vector<32x32xbf16>
    %c0_2 = arith.constant 0 : index
    %c0_3 = arith.constant 0 : index
    %4 = vector.load %arg4[%c0_2, %c0_3] : memref<32x1xf32, #tpu.memory_space<vmem>>, vector<32x1xf32>
    %c0_4 = arith.constant 0 : index
    %c0_5 = arith.constant 0 : index
    %c0_6 = arith.constant 0 : index
    %5 = vector.load %arg2[%c0_4, %c0_5, %c0_6] : memref<1x32x256xbf16, #tpu.memory_space<vmem>>, vector<1x32x256xbf16>
    %6 = vector.shape_cast %5 : vector<1x32x256xbf16> to vector<32x256xbf16>
    %cst = arith.constant dense<0.000000e+00> : vector<32x256xf32>
    %7 = tpu.matmul %3, %6, %cst {dimension_numbers = #tpu.dot_dimension_numbers<[1], [0], [0], [1], [0, 0, 1, 1], [], []>} : vector<32x32xbf16>, vector<32x256xbf16>, vector<32x256xf32> -> vector<32x256xf32>
    %c0_7 = arith.constant 0 : index
    %c0_8 = arith.constant 0 : index
    %c0_9 = arith.constant 0 : index
    %8 = vector.load %arg7[%c0_7, %c0_8, %c0_9] : memref<1x32x1xf32, #tpu.memory_space<vmem>>, vector<1x32x1xf32>
    %9 = vector.shape_cast %8 : vector<1x32x1xf32> to vector<32x1xf32>
    %cst_10 = arith.constant dense<0.000000e+00> : vector<32xf32>
    %10 = vector.multi_reduction <add>, %7, %cst_10 [1] : vector<32x256xf32> to vector<32xf32>
    %11 = vector.shape_cast %10 : vector<32xf32> to vector<32x1xf32>
    %12 = arith.addf %9, %11 : vector<32x1xf32>
    %c0_11 = arith.constant 0 : index
    %c0_12 = arith.constant 0 : index
    %c0_13 = arith.constant 0 : index
    %13 = vector.load %arg7[%c0_11, %c0_12, %c0_13] : memref<1x32x1xf32, #tpu.memory_space<vmem>>, vector<1x32x1xf32>
    %14 = vector.shape_cast %13 : vector<1x32x1xf32> to vector<32x1xf32>
    %15 = vector.shape_cast %12 : vector<32x1xf32> to vector<1x32x1xf32>
    tpu.vector_store %arg7[%c0_11, %c0_12, %c0_13], %15 {strides = array<i32>} : memref<1x32x1xf32, #tpu.memory_space<vmem>>, vector<1x32x1xf32>,
    %16 = vector.broadcast %4 : vector<32x1xf32> to vector<32x256xf32>
    %17 = arith.addf %7, %16 : vector<32x256xf32>
    %18 = arith.negf %17 : vector<32x256xf32>
    %19 = math.exp %18 : vector<32x256xf32>
    %cst_14 = arith.constant 1.000000e+00 : f32
    %20 = vector.broadcast %cst_14 : f32 to vector<32x256xf32>
    %21 = arith.addf %20, %19 : vector<32x256xf32>
    %22 = arith.divf %20, %21 : vector<32x256xf32>
    %c0_15 = arith.constant 0 : index
    %c0_16 = arith.constant 0 : index
    %c0_17 = arith.constant 0 : index
    %23 = vector.load %arg8[%c0_15, %c0_16, %c0_17] : memref<1x32x32xf32, #tpu.memory_space<vmem>>, vector<1x32x32xf32>
    %24 = vector.shape_cast %23 : vector<1x32x32xf32> to vector<32x32xf32>
    %25 = arith.truncf %22 : vector<32x256xf32> to vector<32x256xbf16>
    %cst_18 = arith.constant dense<0.000000e+00> : vector<32x32xf32>
    %26 = tpu.matmul %25, %6, %cst_18 {dimension_numbers = #tpu.dot_dimension_numbers<[1], [1], [0], [0], [0, 0, 1, 0], [], []>} : vector<32x256xbf16>, vector<32x256xbf16>, vector<32x32xf32> -> vector<32x32xf32>
    %27 = arith.addf %24, %26 : vector<32x32xf32>
    %c0_19 = arith.constant 0 : index
    %c0_20 = arith.constant 0 : index
    %c0_21 = arith.constant 0 : index
    %28 = vector.load %arg8[%c0_19, %c0_20, %c0_21] : memref<1x32x32xf32, #tpu.memory_space<vmem>>, vector<1x32x32xf32>
    %29 = vector.shape_cast %28 : vector<1x32x32xf32> to vector<32x32xf32>
    %30 = vector.shape_cast %27 : vector<32x32xf32> to vector<1x32x32xf32>
    tpu.vector_store %arg8[%c0_19, %c0_20, %c0_21], %30 {strides = array<i32>} : memref<1x32x32xf32, #tpu.memory_space<vmem>>, vector<1x32x32xf32>,
    %c0_i32_22 = arith.constant 0 : i32
    %31 = arith.cmpi eq, %arg1, %c0_i32_22 : i32
    %32 = arith.extui %31 : i1 to i32
    %c0_i32_23 = arith.constant 0 : i32
    %33 = arith.cmpi ne, %32, %c0_i32_23 : i32
    scf.if %33 {
      %c0_24 = arith.constant 0 : index
      %c0_25 = arith.constant 0 : index
      %c0_26 = arith.constant 0 : index
      %34 = vector.load %arg7[%c0_24, %c0_25, %c0_26] : memref<1x32x1xf32, #tpu.memory_space<vmem>>, vector<1x32x1xf32>
      %cst_27 = arith.constant 3.906250e-03 : f32
      %35 = vector.broadcast %cst_27 : f32 to vector<1x32x1xf32>
      %36 = arith.mulf %34, %35 : vector<1x32x1xf32>
      %37 = vector.shape_cast %4 : vector<32x1xf32> to vector<1x32x1xf32>
      %38 = arith.addf %36, %37 : vector<1x32x1xf32>
      %c0_28 = arith.constant 0 : index
      %c0_29 = arith.constant 0 : index
      %c0_30 = arith.constant 0 : index
      %39 = vector.load %arg5[%c0_28, %c0_29, %c0_30] : memref<1x32x1xf32, #tpu.memory_space<vmem>>, vector<1x32x1xf32>
      tpu.vector_store %arg5[%c0_28, %c0_29, %c0_30], %38 {strides = array<i32>} : memref<1x32x1xf32, #tpu.memory_space<vmem>>, vector<1x32x1xf32>,
      %c0_31 = arith.constant 0 : index
      %c0_32 = arith.constant 0 : index
      %c0_33 = arith.constant 0 : index
      %40 = vector.load %arg8[%c0_31, %c0_32, %c0_33] : memref<1x32x32xf32, #tpu.memory_space<vmem>>, vector<1x32x32xf32>
      %cst_34 = arith.constant 3.906250e-03 : f32
      %41 = vector.broadcast %cst_34 : f32 to vector<1x32x32xf32>
      %42 = arith.mulf %40, %41 : vector<1x32x32xf32>
      %c0_35 = arith.constant 0 : index
      %c0_36 = arith.constant 0 : index
      %c0_37 = arith.constant 0 : index
      %43 = vector.load %arg6[%c0_35, %c0_36, %c0_37] : memref<1x32x32xf32, #tpu.memory_space<vmem>>, vector<1x32x32xf32>
      tpu.vector_store %arg6[%c0_35, %c0_36, %c0_37], %42 {strides = array<i32>} : memref<1x32x32xf32, #tpu.memory_space<vmem>>, vector<1x32x32xf32>,
    } else {
    }
    return
  }
  func.func @transform_0(%arg0: i32, %arg1: i32) -> (i32, i32, i32) {
    %c0_i32 = arith.constant 0 : i32
    %c0_i32_0 = arith.constant 0 : i32
    return %arg0, %c0_i32, %arg1 : i32, i32, i32
  }
  func.func @transform_1(%arg0: i32, %arg1: i32) -> (i32, i32) {
    %c0_i32 = arith.constant 0 : i32
    %c0_i32_0 = arith.constant 0 : i32
    %c0_i32_1 = arith.constant 0 : i32
    return %c0_i32, %c0_i32_0 : i32, i32
  }
  func.func @transform_2(%arg0: i32, %arg1: i32) -> (i32, i32) {
    %c0_i32 = arith.constant 0 : i32
    %c0_i32_0 = arith.constant 0 : i32
    %c0_i32_1 = arith.constant 0 : i32
    return %c0_i32, %c0_i32_0 : i32, i32
  }
  func.func @transform_3(%arg0: i32, %arg1: i32) -> (i32, i32, i32) {
    %c0_i32 = arith.constant 0 : i32
    %c0_i32_0 = arith.constant 0 : i32
    %c0_i32_1 = arith.constant 0 : i32
    return %arg0, %c0_i32, %c0_i32_0 : i32, i32, i32
  }
  func.func @transform_4(%arg0: i32, %arg1: i32) -> (i32, i32, i32) {
    %c0_i32 = arith.constant 0 : i32
    %c0_i32_0 = arith.constant 0 : i32
    %c0_i32_1 = arith.constant 0 : i32
    return %arg0, %c0_i32, %c0_i32_0 : i32, i32, i32
  }
}

</mosaic_0001>

<bundles_post_ra>
// kernel: tpu_custom_call.1
= control target key start
LH: loop header
LB: loop body
LE: loop exit
PB: predicated region body
PF: predicated region fallthrough
CT: control target
= control target key end

     0   :  { %10 = vsyncpa [#allocation5], 0  ;;  %s1421_s0 = inlined_call_operand.hbm [shape: bf16[2,32,256], index: 0, kind: input, shape index: {}]   ;;  %s1422_s1 = inlined_call_operand.vmem [shape: bf16[32,32], index: 1, kind: input, shape index: {}]   ;;  %s1423_s2 = inlined_call_operand.vmem [shape: f32[32,1], index: 2, kind: input, shape index: {}]   ;;  %s1424_s3 = inlined_call_operand.vmem [shape: f32[2,32,1], index: 3, kind: output, shape index: {0}]   ;;  %s1425_s4 = inlined_call_operand.hbm [shape: f32[2,32,32], index: 4, kind: output, shape index: {1}]  }
   0x1   :  { %12 = vsyncpa [#allocation5 + $0x1], 0 }
   0x2   :  { %13 = vsyncpa [#allocation6], 0 }
   0x3   :  { %15 = vsyncpa [#allocation6 + $0x1], 0  ;;  %s1082_s15 = smov 0   ;;  %s1084_s16 = smov 0  }
   0x4   :  { %s1086_s17 = smov 0   ;;  %s1088_s18 = smov 0  }
   0x5   :  { %s1090_s19 = smov 0   ;;  %s1092_s20 = smov 0  }
   0x6 LB: > { %s773_s21 = sadd.s32 4294967295, %s1049_s20   ;;  %s774_s22 = sadd.s32 4294967294, %s1049_s20   ;;  %s1049_s20 = sphi %s1092_s20, %s21_s20   ;;  %s1045_s19 = sphi %s1090_s19, %s1450_s19   ;;  %s1041_s18 = sphi %s1088_s18, %s1449_s18   ;;  %s1037_s17 = sphi %s1086_s17, %s1448_s17   ;;  %s1033_s16 = sphi %s1084_s16, %s1447_s16   ;;  %s1029_s15 = sphi %s1082_s15, %s1446_s15  }
   0x7   : > { %s33_s23 = sadd.s32 1, %s1045_s19  ;;  %s42_s24 = sadd.s32 1, %s1037_s17 }
   0x8   : > { %p35_p0 = scmp.ge.s32.totalorder %s33_s23, 2  ;;  %p49_p1 = scmp.ne.s32.totalorder %s1037_s17, %s1033_s16 }
   0x9   : > { %p50_p2 = scmp.eq.s32.totalorder %s1049_s20, 0  ;;  %p55_p3 = scmp.ne.s32.totalorder %s1033_s16, %s1029_s15 }
   0xa   : > { %s1452_s23 = smov (%p35_p0, %s33_s23), 0  ;;  %p56_p5 = scmp.eq.s32.totalorder %s773_s21, 0 }
   0xb   : > { %p1123_p4 = por %p50_p2, %p49_p1  ;;  %s37_s26 = ssub.s32 %s1045_s19, %s1452_s23 }
   0xc   : > { %p147_p6 = scmp.eq.s32.totalorder %s773_s21, 1  ;;  %p40_p7 = scmp.eq.s32.totalorder %s37_s26, 0 }
   0xd   : > { %p1129_p8 = por %p56_p5, %p55_p3  ;;  %p153_p10 = scmp.eq.s32.totalorder %s774_s22, 1 }
   0xe   : > { %p1133_p9 = por %p147_p6, %p49_p1  ;;  %p776_p12 = scmp.ge.s32.totalorder %s1049_s20, 2 }
   0xf   : > { %s1138_s29 = scalar_select %p40_p7, %s1037_s17, %s42_s24  }
  0x10   : > { %p1140_p11 = por %p153_p10, %p55_p3  ;;  %p847_p13 = scmp.lt.s32.totalorder %s1049_s20, 2 }
  0x11   : > { %s179_s5 = sand.u32 1, %s1037_s17   ;;  %s826_s7 = sshll.u32 %s1045_s19, 5 }
  0x12   : > { %s777_s6 = sshll.u32 %s179_s5, 5  ;;  %s190_s10 = scalar_lea.hbm %s1421_s0, %s826_s7 }
  0x13   : > { %s183_s11 = scalar_lea.vmem [#allocation4], %s777_s6  ;;  %s191_s13 = sshll.u32 %s190_s10, 4  ;;  %s192_s13 = int_to_ptr.hbm [resolvable:$true] %s191_s13 }
  0x14   : > { %s193_s12 = sshll.u32 %s183_s11, 4  ;;  %p840_p0 = pnand %p847_p13, %p1123_p4  ;;  %s194_s12 = int_to_ptr.vmem [resolvable:$true] %s193_s12 }
  0x15   : > { %p780_p1 = scmp.ge.s32.totalorder %s1049_s20, 1  ;;  %s180_s14 = scalar_lea.sflag [#allocation5], %s179_s5 }
  0x16   : > { %s1051_s21 = smov 128   ;;  %s1052_s22 = smov 8  }
  0x17   : > { %842 = dma.hbm_to_vmem [thread:$0]  (!%p840_p0), %s192_s13, 512, %s194_s12, %s180_s14, %s1051_s21, %s1051_s21, %s1052_s22  }
  0x18   : > { %p201_p2 = scmp.lt.s32.totalorder %s1049_s20, 3 }
  0x1a   : > { %p202_p3 = pnand %p780_p1, %p201_p2 }
  0x1b   : > { %s1156_s24 = sand.u32 (!%p202_p3), 1, %s1033_s16  }
  0x1c   : > { %205 = sbr.rel (%p202_p3) target bundleno = 387 (0x183), region = 32  ;;  %s781_s26 = sshll.u32 (!%p202_p3), %s1156_s24, 5 }
  0x1d   : > { %s208_s6 = scalar_lea.sflag (!%p202_p3), [#allocation5], %s1156_s24  ;;  %s211_s25 = scalar_lea.vmem (!%p202_p3), [#allocation4], %s781_s26 }
  0x21   : > { %1020 = dma.done.wait (%p1129_p8), %s208_s6, 512  }
  0x22   : > { %1022 = vsyncadd (%p1129_p8), %s208_s6, 4294966784  ;;  %v1053_v0 = vmov 0   ;;  %v803_v1 = vld [vmem:[%s211_s25 + $0x10] sm:$0xf]  ;;  %v833_v2 = vld [vmem:[%s211_s25 + $0x14] sm:$0xf0] }
  0x23   : > { %903 = vset.pattern.permute.xlu0 %v1053_v0  ;;  %904 = vset.pattern.permute.xlu1 %v1053_v0  ;;  %v832_v3 = vld [vmem:[%s211_s25 + $0x14] sm:$0xf]  ;;  %v804_v4 = vor.u32 %v833_v2, %v803_v1  ;;  %v805_v5 = vld [vmem:[%s211_s25 + $0x18] sm:$0xf0]  ;;  %v795_v6 = vld [vmem:[%s211_s25] sm:$0xf] }
  0x24   : > { %v831_v7 = vld [vmem:[%s211_s25 + $0x4] sm:$0xf0]  ;;  %v808_v8 = vor.u32 %v832_v3, %v805_v5  ;;  %v830_v9 = vld [vmem:[%s211_s25 + $0x4] sm:$0xf]  ;;  %v797_v10 = vld [vmem:[%s211_s25 + $0x8] sm:$0xf0] }
  0x25   : > { %318 = vmatpush.bf16.msra.mxu0 %v804_v4  ;;  %v796_v11 = vor.u32 %v831_v7, %v795_v6  ;;  %v1169_v12 = vld [vmem:[%s1423_s2] sm:$0xff]  ;;  %569 = vmatpush.bf16.xpose.msra.mxu2 %v804_v4  ;;  %v800_v13 = vor.u32 %v830_v9, %v797_v10  ;;  %v1175_v14 = vld [vmem:[%s1423_s2 + $0x10] sm:$0xff]  ;;  %vm258_vm0 = vcmask 261120   ;;  %v1184_v16 = vld [vmem:[%s1423_s2 + $0x8] sm:$0xff]  ;;  %vm253_vm10 = vcmask 7168   ;;  %p243_p4 = scmp.lt.s32.totalorder %s1041_s18, 1 }
  0x26   : > { %337 = vmatpush.bf16.msra.mxu1 %v808_v8  ;;  %377 = vperm.xlu0 %903, %v1169_v12   ;;  %v828_v15 = vld [vmem:[%s1422_s1] sm:$0xff]  ;;  %v1190_v17 = vld [vmem:[%s1423_s2 + $0x18] sm:$0xff]  ;;  %v829_v18 = vld [vmem:[%s1422_s1 + $0x8] sm:$0xff]  ;;  %s241_s8 = scalar_lea.vmem [#allocation7], %s781_s26  ;;  %s834_s9 = sshll.u32 %s1041_s18, 5 }
  0x27   : > { %387 = vperm.xlu1 %904, %v1175_v14   ;;  %588 = vmatpush.bf16.xpose.msra.mxu3 %v808_v8  ;;  %s244_s6 = scalar_select %p243_p4, %s1041_s18, 1 }
  0x28   : > { %s660_s11 = scalar_lea.hbm %s1425_s4, %s834_s9  ;;  %s661_s12 = sshll.u32 %s241_s8, 4  ;;  %s662_s12 = int_to_ptr.vmem [resolvable:$true] %s661_s12 }
  0x29   : > { %319 = vmatpush.bf16.msra.mxu0 %v796_v11  ;;  %s827_s25 = sshll.u32 %s244_s6, 5  ;;  %s663_s13 = sshll.u32 %s660_s11, 4  ;;  %s664_s13 = int_to_ptr.hbm [resolvable:$true] %s663_s13 }
  0x2a   : > { %338 = vmatpush.bf16.msra.mxu1 %v800_v13  ;;  %s247_s27 = scalar_lea.vmem %s1424_s3, %s827_s25  ;;  %s646_s18 = scalar_lea.sflag [#allocation6], %s1156_s24 }
  0x2b   : > { %s981_s14 = sshra.s32 %s664_s13, 4  ;;  %s987_s25 = scalar_lea.hbm %s1425_s4, 64  ;;  %s982_s14 = int_to_ptr.hbm [resolvable:$true] %s981_s14 }
  0x2c   : > { %809 = vmatmul.msk.bf16.vlgmr.msra.gmra.mxu0 %vm258_vm0, %v828_v15  ;;  %s983_s21 = scalar_lea.hbm %s982_s14, 32  ;;  %p988_p8 = scmp.lt.s32.totalorder %s982_s14, %s1425_s4 }
  0x2d   : > { %811 = vmatmul.msk.bf16.vlgmr.msra.gmra.mxu1 %vm258_vm0, %v828_v15  ;;  %570 = vmatpush.bf16.xpose.msra.mxu2 %v796_v11  ;;  %p984_p5 = scmp.ne.s32.totalorder %s982_s14, %s983_s21  ;;  %p989_p10 = scmp.lt.s32.totalorder %s987_s25, %s983_s21 }
  0x2e   : > { %382 = vperm.xlu0 %903, %v1184_v16  }
  0x2f   : > { %392 = vperm.xlu1 %904, %v1190_v17   ;;  %589 = vmatpush.bf16.xpose.msra.mxu3 %v800_v13  ;;  %p985_p6 = pnand %p984_p5, %p1133_p9  ;;  %p990_p13 = por %p989_p10, %p988_p8 }
  0x31   : > { %p986_p7 = pneg %p985_p6 }
  0x33   : > { %p991_p0 = pnand %p990_p13, %p986_p7 }
  0x3c   : > { %810 = vmatmul.msk.bf16.gmra.mxu0 %vm258_vm0, %v829_v18 }
  0x3d   : > { %812 = vmatmul.msk.bf16.gmra.mxu1 %vm258_vm0, %v829_v18 }
  0x98   : > { %v378_v19 = vpop.permute.xlu0 %377 }
  0x99   : > { %v388_v39 = vpop.permute.xlu1 %387 }
  0xa0   : > { %v383_v27 = vpop.permute.xlu0 %382 }
  0xa1   : > { %v393_v56 = vpop.permute.xlu1 %392 }
  0xa9   : > { %v321_v20 = vpop.f32.mrf.mxu0 }
  0xaa   : > { %v395_v21 = vadd.f32 %v378_v19, %v321_v20  ;;  %v340_v22 = vpop.f32.mrf.mxu1 }
  0xab   : > { %v396_v23 = vadd.f32 %v378_v19, %v340_v22  ;;  %v354_v24 = vadd.f32 %v340_v22, %v321_v20 }
  0xac   : > { %v813_v25 = vmul.f32 -1.442695, %v395_v21 }
  0xad   : > { %v814_v26 = vmul.f32 -1.442695, %v396_v23  ;;  %355 = vadd.xlane.f32.xlu2 %v354_v24 }
  0xae   : > { %905 = vpow2.f32 %v813_v25 }
  0xaf   : > { %907 = vpow2.f32 %v814_v26 }
  0xb1   : > { %v323_v28 = vpop.f32.mrf.mxu0 }
  0xb2   : > { %v397_v29 = vadd.f32 %v383_v27, %v323_v28  ;;  %v342_v30 = vpop.f32.mrf.mxu1 }
  0xb3   : > { %v398_v31 = vadd.f32 %v383_v27, %v342_v30  ;;  %v357_v32 = vadd.f32 %v342_v30, %v323_v28 }
  0xb4   : > { %v906_v33 = vpop.eup %905  ;;  %v815_v34 = vmul.f32 -1.442695, %v397_v29 }
  0xb5   : > { %v908_v35 = vpop.eup %907  ;;  %v1200_v36 = vadd.f32 1.0, %v906_v33  ;;  %v816_v37 = vmul.f32 -1.442695, %v398_v31  ;;  %358 = vadd.xlane.f32.xlu2 %v357_v32 }
  0xb6   : > { %v1202_v38 = vadd.f32 1.0, %v908_v35  ;;  %909 = vpow2.f32 %v815_v34 }
  0xb7   : > { %911 = vrcp.f32 %v1200_v36  ;;  %vm440_vm1 = vweird.f32 %v1200_v36  ;;  %v444_v0 = vand.u32 2147483647, %v1200_v36  ;;  %v446_v3 = vand.u32 2147483648, %v1200_v36 }
  0xb8   : > { %913 = vrcp.f32 %v1202_v38  ;;  %vm455_vm2 = vweird.f32 %v1202_v38  ;;  %v459_v4 = vand.u32 2147483647, %v1202_v38  ;;  %v461_v8 = vand.u32 2147483648, %v1202_v38 }
  0xb9   : > { %915 = vpow2.f32 %v816_v37  ;;  %v326_v40 = vpop.f32.mrf.mxu0  ;;  %vm1238_vm4 = vcmp.eq.f32.partialorder %v444_v0, 8.507059e+37  ;;  %v447_v22 = vor.u32 1.1754944e-38, %v446_v3 }
  0xba   : > { %v399_v41 = vadd.f32 %v388_v39, %v326_v40  ;;  %v345_v42 = vpop.f32.mrf.mxu1  ;;  %vm1245_vm7 = vcmp.eq.f32.partialorder %v459_v4, 8.507059e+37 }
  0xbb   : > { %v400_v43 = vadd.f32 %v388_v39, %v345_v42  ;;  %v360_v44 = vadd.f32 %v345_v42, %v326_v40  ;;  %v1054_v42 = vmov 0.0  }
  0xbc   : > { %v910_v45 = vpop.eup %909  ;;  %v817_v46 = vmul.f32 -1.442695, %v399_v41  ;;  %254 = vst.msk [vmem:[#allocation2] sm:$0xff] %vm253_vm10, %v1054_v42 }
  0xbd   : > { %v1206_v47 = vpop.eup %911  ;;  %v1208_v48 = vadd.f32 1.0, %v910_v45  ;;  %v818_v49 = vmul.f32 -1.442695, %v400_v43  ;;  %361 = vadd.xlane.f32.xlu0 %v360_v44  ;;  %255 = vst.msk [vmem:[#allocation2 + $0x8] sm:$0xff] %vm253_vm10, %v1054_v42 }
  0xbe   : > { %v1210_v50 = vpop.eup %913  ;;  %917 = vpow2.f32 %v817_v46  ;;  %v436_v51 = vmul.f32 %v1206_v47, %v1200_v36  ;;  %vm441_vm3 = vweird.f32 %v1206_v47  ;;  %256 = vst.msk [vmem:[#allocation2 + $0x10] sm:$0xff] %vm253_vm10, %v1054_v42 }
  0xbf   : > { %v916_v52 = vpop.eup %915  ;;  %919 = vrcp.f32 %v1208_v48  ;;  %v451_v55 = vmul.f32 %v1210_v50, %v1202_v38  ;;  %v474_v11 = vand.u32 2147483647, %v1208_v48  ;;  %v476_v19 = vand.u32 2147483648, %v1208_v48  ;;  %vm1254_vm8 = vmor %vm440_vm1, %vm441_vm3  ;;  %257 = vst.msk [vmem:[#allocation2 + $0x18] sm:$0xff] %vm253_vm10, %v1054_v42 }
  0xc0   : > { %v1215_v53 = vadd.f32 1.0, %v916_v52  ;;  %921 = vpow2.f32 %v818_v49  ;;  %v437_v54 = vsub.f32 1.0, %v436_v51  ;;  %vm470_vm5 = vweird.f32 %v1208_v48  ;;  %259 = vst.msk [vmem:[#allocation3] sm:$0xff] %vm258_vm0, %v1054_v42 }
  0xc1   : > { %v328_v57 = vpop.f32.mrf.mxu0  ;;  %v452_v60 = vsub.f32 1.0, %v451_v55  ;;  %vm456_vm6 = vweird.f32 %v1210_v50  ;;  %vm1262_vm11 = vcmp.eq.f32.partialorder %v474_v11, 8.507059e+37  ;;  %v477_v31 = vor.u32 1.1754944e-38, %v476_v19  ;;  %260 = vst.msk [vmem:[#allocation3 + $0x8] sm:$0xff] %vm258_vm0, %v1054_v42 }
  0xc2   : > { %923 = vrcp.f32 %v1215_v53  ;;  %v401_v58 = vadd.f32 %v393_v56, %v328_v57  ;;  %v347_v59 = vpop.f32.mrf.mxu1  ;;  %v438_v63 = vmul.f32 %v1206_v47, %v437_v54  ;;  %vm1268_vm12 = vmor %vm455_vm2, %vm456_vm6  ;;  %vm485_vm13 = vweird.f32 %v1215_v53  ;;  %261 = vst.msk [vmem:[#allocation3 + $0x10] sm:$0xff] %vm258_vm0, %v1054_v42 }
  0xc3   : > { %v363_v61 = vadd.f32 %v347_v59, %v328_v57  ;;  %v402_v62 = vadd.f32 %v393_v56, %v347_v59  ;;  %v453_v13 = vmul.f32 %v1210_v50, %v452_v60  ;;  %v491_v36 = vand.u32 2147483648, %v1215_v53  ;;  %262 = vst.msk [vmem:[#allocation3 + $0x18] sm:$0xff] %vm258_vm0, %v1054_v42 }
  0xc4   : > { %v918_v1 = vpop.eup %917  ;;  %v819_v2 = vmul.f32 -1.442695, %v401_v58  ;;  %v439_v18 = vadd.f32 %v1206_v47, %v438_v63  ;;  %v489_v38 = vand.u32 2147483647, %v1215_v53  ;;  %v462_v55 = vor.u32 1.1754944e-38, %v461_v8 }
  0xc5   : > { %v920_v5 = vpop.eup %919  ;;  %v1226_v6 = vadd.f32 1.0, %v918_v1  ;;  %v820_v7 = vmul.f32 -1.442695, %v402_v62  ;;  %364 = vadd.xlane.f32.xlu1 %v363_v61  ;;  %v454_v28 = vadd.f32 %v1210_v50, %v453_v13 }
  0xc6   : > { %v922_v9 = vpop.eup %921  ;;  %925 = vpow2.f32 %v819_v2  ;;  %v466_v10 = vmul.f32 %v920_v5, %v1208_v48  ;;  %vm471_vm9 = vweird.f32 %v920_v5  ;;  %v443_v29 = vsel %vm1254_vm8, %v1206_v47, %v439_v18 }
  0xc7   : > { %927 = vrcp.f32 %v1226_v6  ;;  %v1234_v15 = vadd.f32 1.0, %v922_v9  ;;  %vm1280_vm14 = vmor %vm470_vm5, %vm471_vm9  ;;  %v448_v44 = vsel %vm1238_vm4, %v447_v22, %v443_v29  ;;  %v458_v46 = vsel %vm1268_vm12, %v1210_v50, %v454_v28 }
  0xc8   : > { %v924_v20 = vpop.eup %923  ;;  %929 = vpow2.f32 %v820_v7  ;;  %v467_v23 = vsub.f32 1.0, %v466_v10  ;;  %v492_v50 = vor.u32 1.1754944e-38, %v491_v36  ;;  %vm490_vm2 = vcmp.eq.f32.partialorder %v489_v38, 8.507059e+37 }
  0xc9   : > { %931 = vrcp.f32 %v1234_v15  ;;  %v481_v25 = vmul.f32 %v924_v20, %v1215_v53  ;;  %vm486_vm15 = vweird.f32 %v924_v20  ;;  %v463_v59 = vsel %vm1245_vm7, %v462_v55, %v458_v46 }
  0xca   : > { %v468_v27 = vmul.f32 %v920_v5, %v467_v23  ;;  %vm487_vm1 = vmor %vm485_vm13, %vm486_vm15  ;;  %vm500_vm3 = vweird.f32 %v1226_v6  ;;  %v504_v3 = vand.u32 2147483647, %v1226_v6  ;;  %v506_v4 = vand.u32 2147483648, %v1226_v6 }
  0xcb   : > { %v482_v32 = vsub.f32 1.0, %v481_v25  ;;  %vm515_vm4 = vweird.f32 %v1234_v15  ;;  %v519_v11 = vand.u32 2147483647, %v1234_v15  ;;  %v521_v21 = vand.u32 2147483648, %v1234_v15 }
  0xcc   : > { %v926_v33 = vpop.eup %925  ;;  %v469_v34 = vadd.f32 %v920_v5, %v468_v27  ;;  %vm505_vm13 = vcmp.eq.f32.partialorder %v504_v3, 8.507059e+37  ;;  %v507_v27 = vor.u32 1.1754944e-38, %v506_v4  ;;  %v556_v4 = vld [vmem:[#allocation3 + $0x8] sm:$0xff] }
  0xcd   : > { %v1274_v37 = vpop.eup %927  ;;  %v1276_v39 = vadd.f32 1.0, %v926_v33  ;;  %v483_v41 = vmul.f32 %v924_v20, %v482_v32  ;;  %v522_v33 = vor.u32 1.1754944e-38, %v521_v21 }
  0xce   : > { %v930_v43 = vpop.eup %929  ;;  %v473_v45 = vsel %vm1280_vm14, %v920_v5, %v469_v34  ;;  %v496_v47 = vmul.f32 %v1274_v37, %v1226_v6  ;;  %vm501_vm5 = vweird.f32 %v1274_v37 }
  0xcf   : > { %v1296_v48 = vpop.eup %931  ;;  %933 = vrcp.f32 %v1276_v39  ;;  %v1299_v49 = vadd.f32 1.0, %v930_v43  ;;  %v478_v51 = vsel %vm1262_vm11, %v477_v31, %v473_v45  ;;  %v484_v52 = vadd.f32 %v924_v20, %v483_v41  ;;  %vm1334_vm8 = vmor %vm500_vm3, %vm501_vm5  ;;  %v350_v41 = vld [vmem:[#allocation2] sm:$0xff]  ;;  %v351_v43 = vld [vmem:[#allocation2 + $0x8] sm:$0xff] }
  0xd0   : > { %v559_v54 = vpack.c.bf16 %v478_v51, %v448_v44  ;;  %v497_v56 = vsub.f32 1.0, %v496_v47  ;;  %v511_v58 = vmul.f32 %v1296_v48, %v1234_v15  ;;  %v534_v9 = vand.u32 2147483647, %v1276_v39 }
  0xd1   : > { %935 = vrcp.f32 %v1299_v49  ;;  %v488_v57 = vsel %vm487_vm1, %v924_v20, %v484_v52  ;;  %v536_v10 = vand.u32 2147483648, %v1276_v39  ;;  %vm516_vm6 = vweird.f32 %v1296_v48 }
  0xd2   : > { %571 = vmatmul.bf16.vlgmr.msra.gmra.mxu2 %v559_v54  ;;  %v493_v60 = vsel %vm490_vm2, %v492_v50, %v488_v57  ;;  %v512_v61 = vsub.f32 1.0, %v511_v58  ;;  %v498_v62 = vmul.f32 %v1274_v37, %v497_v56  ;;  %vm530_vm9 = vweird.f32 %v1276_v39  ;;  %vm1347_vm11 = vmor %vm515_vm4, %vm516_vm6  ;;  %v353_v56 = vld [vmem:[#allocation2 + $0x18] sm:$0xff] }
  0xd3   : > { %v560_v53 = vpack.c.bf16 %v493_v60, %v463_v59  ;;  %v549_v22 = vand.u32 2147483647, %v1299_v49  ;;  %v551_v23 = vand.u32 2147483648, %v1299_v49  ;;  %vm535_vm15 = vcmp.eq.f32.partialorder %v534_v9, 8.507059e+37 }
  0xd4   : > { %v513_v1 = vmul.f32 %v1296_v48, %v512_v61  ;;  %v499_v5 = vadd.f32 %v1274_v37, %v498_v62  ;;  %v537_v28 = vor.u32 1.1754944e-38, %v536_v10  ;;  %vm545_vm1 = vweird.f32 %v1299_v49  ;;  %v557_v10 = vld [vmem:[#allocation3 + $0x10] sm:$0xff] }
  0xd5   : > { %v934_v63 = vpop.eup %933  ;;  %590 = vmatmul.bf16.vlgmr.msra.gmra.mxu3 %v560_v53  ;;  %v552_v34 = vor.u32 1.1754944e-38, %v551_v23  ;;  %vm520_vm3 = vcmp.eq.f32.partialorder %v519_v11, 8.507059e+37  ;;  %vm550_vm4 = vcmp.eq.f32.partialorder %v549_v22, 8.507059e+37  ;;  %v558_v22 = vld [vmem:[#allocation3 + $0x18] sm:$0xff] }
  0xd6   : > { %v526_v0 = vmul.f32 %v934_v63, %v1276_v39  ;;  %vm531_vm7 = vweird.f32 %v934_v63  ;;  %v514_v18 = vadd.f32 %v1296_v48, %v513_v1  ;;  %v503_v24 = vsel %vm1334_vm8, %v1274_v37, %v499_v5 }
  0xd7   : > { %v936_v2 = vpop.eup %935  ;;  %vm532_vm14 = vmor %vm530_vm9, %vm531_vm7  ;;  %v508_v15 = vsel %vm505_vm13, %v507_v27, %v503_v24 }
  0xd8   : > { %v527_v7 = vsub.f32 1.0, %v526_v0  ;;  %v541_v8 = vmul.f32 %v936_v2, %v1299_v49  ;;  %vm546_vm12 = vweird.f32 %v936_v2  ;;  %v518_v30 = vsel %vm1347_vm11, %v1296_v48, %v514_v18  ;;  %v352_v49 = vld [vmem:[#allocation2 + $0x10] sm:$0xff] }
  0xd9   : > { %vm547_vm2 = vmor %vm545_vm1, %vm546_vm12  ;;  %v523_v37 = vsel %vm520_vm3, %v522_v33, %v518_v30 }
  0xda   : > { %v528_v13 = vmul.f32 %v934_v63, %v527_v7  ;;  %v542_v19 = vsub.f32 1.0, %v541_v8 }
  0xdc   : > { %v529_v25 = vadd.f32 %v934_v63, %v528_v13  ;;  %v543_v26 = vmul.f32 %v936_v2, %v542_v19 }
  0xde   : > { %v533_v29 = vsel %vm532_vm14, %v934_v63, %v529_v25  ;;  %v544_v31 = vadd.f32 %v936_v2, %v543_v26  ;;  %v555_v63 = vld [vmem:[#allocation3] sm:$0xff] }
  0xdf   : > { %v538_v32 = vsel %vm535_vm15, %v537_v28, %v533_v29 }
  0xe0   : > { %v561_v35 = vpack.c.bf16 %v538_v32, %v508_v15  ;;  %v548_v36 = vsel %vm547_vm2, %v936_v2, %v544_v31 }
  0xe1   : > { %v553_v39 = vsel %vm550_vm4, %v552_v34, %v548_v36 }
  0xe2   : > { %576 = vmatmul.bf16.gmra.mxu2 %v561_v35  ;;  %v562_v40 = vpack.c.bf16 %v553_v39, %v523_v37 }
  0xe5   : > { %595 = vmatmul.bf16.gmra.mxu3 %v562_v40 }
 0x120   : > { %v356_v38 = vpop.xlane.xlu2 %355 }
 0x121   : > { %v366_v42 = vadd.f32 %v356_v38, %v350_v41 }
 0x123   : > { %371 = vst.msk [vmem:[#allocation2] sm:$0xff] %vm253_vm10, %v366_v42 }
 0x128   : > { %v359_v44 = vpop.xlane.xlu2 %358 }
 0x129   : > { %v367_v45 = vadd.f32 %v359_v44, %v351_v43 }
 0x12a   : > { %v612_v46 = vld [vmem:[#allocation2] sm:$0xff] }
 0x12b   : > { %v616_v47 = vmul.f32 0.00390625, %v612_v46  ;;  %372 = vst.msk [vmem:[#allocation2 + $0x8] sm:$0xff] %vm253_vm10, %v367_v45 }
 0x12d   : > { %v620_v48 = vadd.f32 %v616_v47, %v1169_v12 }
 0x12f   : > { %624 = vst.msk [vmem:[%s247_s27] sm:$0xff] %vm253_vm10, %v620_v48 }
 0x130   : > { %v362_v51 = vpop.xlane.xlu0 %361 }
 0x131   : > { %v368_v52 = vadd.f32 %v362_v51, %v352_v49 }
 0x132   : > { %v613_v54 = vld [vmem:[#allocation2 + $0x8] sm:$0xff] }
 0x133   : > { %v617_v55 = vmul.f32 0.00390625, %v613_v54  ;;  %373 = vst.msk [vmem:[#allocation2 + $0x10] sm:$0xff] %vm253_vm10, %v368_v52 }
 0x135   : > { %v621_v50 = vadd.f32 %v617_v55, %v1184_v16 }
 0x137   : > { %625 = vst.msk [vmem:[%s247_s27 + $0x8] sm:$0xff] %vm253_vm10, %v621_v50 }
 0x138   : > { %v365_v57 = vpop.xlane.xlu1 %364 }
 0x139   : > { %v369_v58 = vadd.f32 %v365_v57, %v353_v56 }
 0x13a   : > { %v614_v59 = vld [vmem:[#allocation2 + $0x10] sm:$0xff] }
 0x13b   : > { %v618_v60 = vmul.f32 0.00390625, %v614_v59  ;;  %374 = vst.msk [vmem:[#allocation2 + $0x18] sm:$0xff] %vm253_vm10, %v369_v58 }
 0x13d   : > { %v622_v12 = vadd.f32 %v618_v60, %v1175_v14 }
 0x13f   : > { %626 = vst.msk [vmem:[%s247_s27 + $0x10] sm:$0xff] %vm253_vm10, %v622_v12 }
 0x142   : > { %v615_v53 = vld [vmem:[#allocation2 + $0x18] sm:$0xff] }
 0x143   : > { %v619_v61 = vmul.f32 0.00390625, %v615_v53 }
 0x145   : > { %v623_v62 = vadd.f32 %v619_v61, %v1190_v17 }
 0x147   : > { %627 = vst.msk [vmem:[%s247_s27 + $0x18] sm:$0xff] %vm253_vm10, %v623_v62 }
 0x155   : > { %v572_v16 = vpop.f32.mrf.mxu2 }
 0x158   : > { %v591_v0 = vpop.f32.mrf.mxu3 }
 0x159   : > { %v592_v1 = vadd.f32 %v591_v0, %v572_v16 }
 0x15b   : > { %v601_v2 = vadd.f32 %v592_v1, %v555_v63 }
 0x15d   : > { %605 = vst.msk [vmem:[#allocation3] sm:$0xff] %vm258_vm0, %v601_v2  ;;  %v574_v3 = vpop.f32.mrf.mxu2 }
 0x160   : > { %v593_v5 = vpop.f32.mrf.mxu3 }
 0x161   : > { %v594_v14 = vadd.f32 %v593_v5, %v574_v3 }
 0x163   : > { %v602_v7 = vadd.f32 %v594_v14, %v556_v4 }
 0x164   : > { %v628_v8 = vld [vmem:[#allocation3] sm:$0xff] }
 0x165   : > { %606 = vst.msk [vmem:[#allocation3 + $0x8] sm:$0xff] %vm258_vm0, %v602_v7  ;;  %v577_v9 = vpop.f32.mrf.mxu2  ;;  %v632_v17 = vmul.f32 0.00390625, %v628_v8 }
 0x167   : > { %636 = vst.msk [vmem:[%s241_s8] sm:$0xff] %vm258_vm0, %v632_v17 }
 0x168   : > { %v596_v11 = vpop.f32.mrf.mxu3 }
 0x169   : > { %v597_v13 = vadd.f32 %v596_v11, %v577_v9 }
 0x16b   : > { %v603_v18 = vadd.f32 %v597_v13, %v557_v10 }
 0x16c   : > { %v629_v19 = vld [vmem:[#allocation3 + $0x8] sm:$0xff] }
 0x16d   : > { %607 = vst.msk [vmem:[#allocation3 + $0x10] sm:$0xff] %vm258_vm0, %v603_v18  ;;  %v633_v20 = vmul.f32 0.00390625, %v629_v19  ;;  %v579_v21 = vpop.f32.mrf.mxu2 }
 0x16f   : > { %637 = vst.msk [vmem:[%s241_s8 + $0x8] sm:$0xff] %vm258_vm0, %v633_v20 }
 0x170   : > { %v598_v23 = vpop.f32.mrf.mxu3 }
 0x171   : > { %v599_v24 = vadd.f32 %v598_v23, %v579_v21 }
 0x173   : > { %v604_v25 = vadd.f32 %v599_v24, %v558_v22 }
 0x174   : > { %v630_v6 = vld [vmem:[#allocation3 + $0x10] sm:$0xff] }
 0x175   : > { %608 = vst.msk [vmem:[#allocation3 + $0x18] sm:$0xff] %vm258_vm0, %v604_v25  ;;  %v634_v26 = vmul.f32 0.00390625, %v630_v6 }
 0x177   : > { %638 = vst.msk [vmem:[%s241_s8 + $0x10] sm:$0xff] %vm258_vm0, %v634_v26 }
 0x17c   : > { %v631_v27 = vld [vmem:[#allocation3 + $0x18] sm:$0xff] }
 0x17d   : > { %v635_v28 = vmul.f32 0.00390625, %v631_v27 }
 0x17f   : > { %639 = vst.msk [vmem:[%s241_s8 + $0x18] sm:$0xff] %vm258_vm0, %v635_v28 }
 0x180   : > { %994 = shalt.err (!%p991_p0)
}
 0x181   : > { %s1055_s24 = smov 128   ;;  %s1056_s27 = smov 8  }
 0x182   : > { %837 = dma.vmem_to_hbm [thread:$0]  (%p1133_p9), %s662_s12, 512, %s664_s13, %s646_s18, %s1055_s24, %s1055_s24, %s1056_s27  }
 0x183 PF: > { %s686_s8 = sand.u32 1, %s1029_s15   ;;  %p844_p1 = pnand %p776_p12, %p1140_p11 }
 0x184   : > { %s687_s9 = scalar_lea.sflag [#allocation6], %s686_s8 }
 0x185   : > { %p845_p2 = pneg %p844_p1 }
 0x187   : > { %1024 = dma.done.wait (%p845_p2), %s687_s9, 512  }
 0x188   : > { %1026 = vsyncadd (%p845_p2), %s687_s9, 4294966784  ;;  %s21_s20 = sadd.s32 1, %s1049_s20   ;;  %s1446_s15 = smov %s1033_s16 }
 0x189   : > { %p18_p3 = scmp.ge.s32.totalorder %s21_s20, 4   ;;  %s1447_s16 = smov %s1037_s17 }
 0x18a   : > { %s1448_s17 = smov %s1138_s29  ;;  %s1449_s18 = smov %s1045_s19 }
 0x18b   : > { %s1450_s19 = smov %s1452_s23  ;;  %20 = sbr.rel (!%p18_p3) target bundleno = 6 (0x6), region = 97 }
 0x190   :  { %693 = vsyncpa [#allocation5], 1 }
 0x191   :  { %695 = vsyncpa [#allocation5 + $0x1], 1 }
 0x192   :  { %696 = vsyncpa [#allocation6], 1 }
 0x193   :  { %698 = vsyncpa [#allocation6 + $0x1], 1 }

</bundles_post_ra>
